<compile_context>
chip_gen: v7x
topology: tpu7x:2x2x1
jax: 0.10.0
libtpu: 0.0.40
codegen_flags: <defaults>
</compile_context>

<pallas_src>
import functools

import jax
import jax.numpy as jnp
from jax.experimental import pallas as pl
from jax.experimental.pallas import tpu as pltpu


def _round_up(n, m):
    return ((n + m - 1) // m) * m


def _cdiv(a, b):
    return -(-a // b)


# ----------------------------------------------------------------------------
# Fused kernel: all LSTM layers (seq_len==1, zero init state) + FC + sigmoid
# ----------------------------------------------------------------------------
def _fused_lstm_fc_kernel(x_ref, w_ref, out_ref, *, layout, hidden_size, out_size):
    """One grid step == one batch tile.

    x_ref  : (Bt, input_size)  f32 batch tile (the single timestep)
    w_ref  : (R, LW)           single packed weight operand in param dtype.
                               Per layer: [W_ih^T rows | bias row (+pad)], then FC.
                               Gate column order i|f|g|o; g columns pre-scaled by 2.
    out_ref: (Bt, out_size)    f32
    layout : static ( ((w_off, in_l, b_off) per layer), (fc_w_off, fc_b_off) )
    """
    H = hidden_size
    lstm_layout, (fc_w_off, fc_b_off) = layout
    pdt = w_ref.dtype          # MXU operand dtype (bf16 = native low-precision path)

    act = x_ref[...]                                              # (Bt, in0) f32
    for w_off, in_l, b_off in lstm_layout:
        w = w_ref[w_off:w_off + in_l, :]                          # (in_l, LW), low precision
        b = w_ref[b_off:b_off + 1, :].astype(jnp.float32)         # (1, LW)
        # Zero initial state + seq_len==1: h_prev @ W_hh and f*c_prev vanish.
        gates = jnp.dot(act.astype(pdt), w,
                        preferred_element_type=jnp.float32) + b   # (Bt, LW) f32
        # One full-lane-width sigmoid covers i, f(dead), sigma(2g) and o.
        sig = jax.nn.sigmoid(gates)
        g_t = 2.0 * sig[:, 2 * H:3 * H] - 1.0                     # tanh(g) = 2*sig(2g) - 1
        c = sig[:, 0:H] * g_t                                     # i * g   (c_prev == 0)
        act = sig[:, 3 * H:4 * H] * jnp.tanh(c)                   # o * tanh(c) -> next input

    w_fc = w_ref[fc_w_off:fc_w_off + H, :]                        # (H, LW); real cols [0:O]
    b_fc = w_ref[fc_b_off:fc_b_off + 1, :].astype(jnp.float32)    # (1, LW)
    logits = jnp.dot(act.astype(pdt), w_fc,
                     preferred_element_type=jnp.float32) + b_fc   # (Bt, LW)
    out_ref[...] = jax.nn.sigmoid(logits)[:, :out_size].astype(out_ref.dtype)


# ----------------------------------------------------------------------------
# Wrapper
# ----------------------------------------------------------------------------
_MAX_B_TILE = 1024   # per review: 256 -> ~63% of HBM roofline, 512+ -> ~85%; at 1024
                     # the per-buffer footprint is ~0.5 MiB/row-block, well inside the
                     # default scoped VMEM on v5e/v6e/v7x.


def make_lstm_forward(layout, hidden_size, out_size):
    kernel = functools.partial(_fused_lstm_fc_kernel, layout=layout,
                               hidden_size=hidden_size, out_size=out_size)

    @jax.jit
    def forward(x, wpack):
        B, in_size = x.shape
        b_al = _round_up(B, 8)
        if b_al <= _MAX_B_TILE:
            n_tiles, b_tile = 1, b_al
        else:
            # v7x megacore: force an EVEN number of grid steps so both TCs get work.
            n_tiles = 2 * _cdiv(b_al, 2 * _MAX_B_TILE)
            b_tile = _round_up(_cdiv(b_al, n_tiles), 8)
        b_pad = n_tiles * b_tile
        if b_pad != B:
            x = jnp.pad(x, ((0, b_pad - B), (0, 0)))

        out = pl.pallas_call(
            kernel,
            out_shape=jax.ShapeDtypeStruct((b_pad, out_size), jnp.float32),
            grid=(n_tiles,),
            in_specs=[
                pl.BlockSpec((b_tile, in_size), lambda i: (i, 0)),
                # Single packed weight operand -> one DMA; constant index_map means
                # it is revisited across grid steps, never re-fetched.
                pl.BlockSpec(wpack.shape, lambda i: (0, 0)),
            ],
            out_specs=pl.BlockSpec((b_tile, out_size), lambda i: (i, 0)),
            compiler_params=pltpu.CompilerParams(
                dimension_semantics=("parallel",)),
            # Footprint at b_tile<=1024 is a few MiB; default scoped VMEM suffices
            # even on v5e (16 MiB).  Re-derive / set vmem_limit_bytes if _MAX_B_TILE
            # is pushed past ~8192.
        )(x, wpack)
        return out[:B]

    return forward


# ----------------------------------------------------------------------------
# Parameters (PyTorch-convention) and kernel-side packing
# ----------------------------------------------------------------------------
def init_params(key, input_size, hidden_size, num_layers, output_size):
    """f32 parameters mirroring nn.LSTM / nn.Linear, gate order i|f|g|o,
    init range U(-1/sqrt(H), 1/sqrt(H))."""
    k = 1.0 / float(hidden_size) ** 0.5
    params = {"lstm": []}
    for layer in range(num_layers):
        in_sz = input_size if layer == 0 else hidden_size
        key, k1, k2, k3, k4 = jax.random.split(key, 5)
        params["lstm"].append({
            "w_ih": jax.random.uniform(k1, (4 * hidden_size, in_sz), minval=-k, maxval=k),
            "w_hh": jax.random.uniform(k2, (4 * hidden_size, hidden_size), minval=-k, maxval=k),
            "b_ih": jax.random.uniform(k3, (4 * hidden_size,), minval=-k, maxval=k),
            "b_hh": jax.random.uniform(k4, (4 * hidden_size,), minval=-k, maxval=k),
        })
    key, k5, k6 = jax.random.split(key, 3)
    params["fc"] = {
        "w": jax.random.uniform(k5, (output_size, hidden_size), minval=-k, maxval=k),
        "b": jax.random.uniform(k6, (output_size,), minval=-k, maxval=k),
    }
    return params


def pack_params(params, param_dtype=jnp.bfloat16):
    """Pack every weight/bias into ONE lane-dense (rows, LW) operand.

    * W_ih stored transposed (in, 4H) so the kernel computes x @ W directly.
    * b_ih + b_hh pre-summed into one bias row (8-row padded for sublane alignment).
    * g-gate columns of W and bias pre-scaled by 2 (tanh(g) = 2*sigmoid(2g) - 1).
    * W_hh / h0 / c0 dropped (dead for seq_len==1, zero initial state).
    * param_dtype=bf16 -> native MXU operands, half the weight DMA bytes.
    Returns (wpack, static layout)."""
    H = params["lstm"][0]["w_ih"].shape[0] // 4
    O = params["fc"]["w"].shape[0]
    LW = _round_up(max(4 * H, O), 128)
    g_scale = jnp.ones((4 * H,), jnp.float32).at[2 * H:3 * H].set(2.0)

    blocks, lstm_layout, r = [], [], 0
    for p in params["lstm"]:
        in_l = p["w_ih"].shape[1]
        w_t = p["w_ih"].T * g_scale[None, :]                       # (in_l, 4H)
        bias = (p["b_ih"] + p["b_hh"]) * g_scale                   # (4H,)
        in_pad = _round_up(in_l, 8)
        blocks.append(jnp.zeros((in_pad, LW), jnp.float32).at[:in_l, :4 * H].set(w_t))
        w_off = r
        r += in_pad
        blocks.append(jnp.zeros((8, LW), jnp.float32).at[0, :4 * H].set(bias))
        b_off = r
        r += 8
        lstm_layout.append((w_off, in_l, b_off))

    H_pad = _round_up(H, 8)
    blocks.append(jnp.zeros((H_pad, LW), jnp.float32).at[:H, :O].set(params["fc"]["w"].T))
    fc_w_off = r
    r += H_pad
    blocks.append(jnp.zeros((8, LW), jnp.float32).at[0, :O].set(params["fc"]["b"]))
    fc_b_off = r
    r += 8

    wpack = jnp.concatenate(blocks, axis=0).astype(param_dtype)
    layout = (tuple(lstm_layout), (fc_w_off, fc_b_off))
    return wpack, layout


# ----------------------------------------------------------------------------
# Pure-JAX reference (full LSTM-cell math incl. the zero-state terms)
# Matmul operands / stored params cast to op_dtype with f32 accumulation, to
# match the kernel's bf16 MXU feed (re-baselined reference per perf review).
# ----------------------------------------------------------------------------
def reference_forward(x, params, op_dtype=jnp.bfloat16):
    B = x.shape[0]
    act = x
    for p in params["lstm"]:
        H = p["w_hh"].shape[1]
        h_prev = jnp.zeros((B, H), jnp.float32)
        c_prev = jnp.zeros((B, H), jnp.float32)
        bias = (p["b_ih"] + p["b_hh"]).astype(op_dtype)
        gates = (jnp.dot(act.astype(op_dtype), p["w_ih"].T.astype(op_dtype),
                         preferred_element_type=jnp.float32)
                 + jnp.dot(h_prev.astype(op_dtype), p["w_hh"].T.astype(op_dtype),
                           preferred_element_type=jnp.float32)
                 + bias)
        i = jax.nn.sigmoid(gates[:, 0:H])
        f = jax.nn.sigmoid(gates[:, H:2 * H])
        g = jnp.tanh(gates[:, 2 * H:3 * H])
        o = jax.nn.sigmoid(gates[:, 3 * H:4 * H])
        c = f * c_prev + i * g
        act = o * jnp.tanh(c)
    logits = (jnp.dot(act.astype(op_dtype), params["fc"]["w"].T.astype(op_dtype),
                      preferred_element_type=jnp.float32)
              + params["fc"]["b"].astype(op_dtype))
    return jax.nn.sigmoid(logits)


# ----------------------------------------------------------------------------
if __name__ == "__main__":
    BATCH = 8
    INPUT_SIZE = 16
    HIDDEN_SIZE = 32          # 4H == 128 -> gates fill one full lane width
    NUM_LAYERS = 2
    OUTPUT_SIZE = 4
    PARAM_DTYPE = jnp.bfloat16   # weights fed to the MXU in bf16; math stays f32

    key = jax.random.PRNGKey(0)
    key, kx = jax.random.split(key)
    x = jax.random.normal(kx, (BATCH, INPUT_SIZE), dtype=jnp.float32)

    params = init_params(key, INPUT_SIZE, HIDDEN_SIZE, NUM_LAYERS, OUTPUT_SIZE)
    wpack, layout = pack_params(params, param_dtype=PARAM_DTYPE)
    forward = make_lstm_forward(layout, HIDDEN_SIZE, OUTPUT_SIZE)

    out = jax.block_until_ready(forward(x, wpack))
    ref = reference_forward(x, params, op_dtype=PARAM_DTYPE)

    assert out.shape == (BATCH, OUTPUT_SIZE), out.shape
    assert bool(jnp.all((out > 0.0) & (out < 1.0)))
    # Both sides use the same bf16 operand rounding; remaining delta is only the
    # transcendental identity tanh(g) == 2*sigmoid(2g) - 1 (approximation-level).
    assert bool(jnp.allclose(out, ref, atol=2e-3, rtol=2e-3)), float(
        jnp.max(jnp.abs(out - ref)))
    print("KERNEL_OK")
</pallas_src>

<mosaic_0001>
module attributes {stable_mosaic.version = 11 : i64} {
  func.func @_fused_lstm_fc_kernel(%arg0: i32, %arg1: memref<8x16xf32, #tpu.memory_space<vmem>>, %arg2: memref<104x128xbf16, #tpu.memory_space<vmem>>, %arg3: memref<8x4xf32, #tpu.memory_space<vmem>>) attributes {dimension_semantics = [#tpu.dimension_semantics<parallel>], iteration_bounds = array<i64: 1>, scalar_prefetch = 0 : i64, scratch_operands = 0 : i64, tpu.core_type = #tpu.core_type<tc>, window_params = [{transform_indices = @transform_0, window_bounds = array<i64: 8, 16>}, {pipeline_mode = #tpu.pipeline_mode<synchronous>, transform_indices = @transform_1, window_bounds = array<i64: 104, 128>}, {transform_indices = @transform_2, window_bounds = array<i64: 8, 4>}]} {
    %c0 = arith.constant 0 : index
    %c0_0 = arith.constant 0 : index
    %0 = vector.load %arg1[%c0, %c0_0] : memref<8x16xf32, #tpu.memory_space<vmem>>, vector<8x16xf32>
    %c0_1 = arith.constant 0 : index
    %c0_2 = arith.constant 0 : index
    %1 = vector.load %arg2[%c0_1, %c0_2] : memref<104x128xbf16, #tpu.memory_space<vmem>>, vector<16x128xbf16>
    %c16 = arith.constant 16 : index
    %c0_3 = arith.constant 0 : index
    %2 = vector.load %arg2[%c16, %c0_3] : memref<104x128xbf16, #tpu.memory_space<vmem>>, vector<1x128xbf16>
    %3 = arith.extf %2 : vector<1x128xbf16> to vector<1x128xf32>
    %4 = arith.truncf %0 : vector<8x16xf32> to vector<8x16xbf16>
    %cst = arith.constant dense<0.000000e+00> : vector<8x128xf32>
    %5 = tpu.matmul %4, %1, %cst {dimension_numbers = #tpu.dot_dimension_numbers<[1], [0], [0], [1], [0, 0, 1, 1], [], []>} : vector<8x16xbf16>, vector<16x128xbf16>, vector<8x128xf32> -> vector<8x128xf32>
    %6 = vector.broadcast %3 : vector<1x128xf32> to vector<8x128xf32>
    %7 = arith.addf %5, %6 : vector<8x128xf32>
    %8 = arith.negf %7 : vector<8x128xf32>
    %9 = math.exp %8 : vector<8x128xf32>
    %cst_4 = arith.constant 1.000000e+00 : f32
    %10 = vector.broadcast %cst_4 : f32 to vector<8x128xf32>
    %11 = arith.addf %10, %9 : vector<8x128xf32>
    %12 = arith.divf %10, %11 : vector<8x128xf32>
    %13 = vector.extract_strided_slice %12 {offsets = [0, 64], sizes = [8, 32], strides = [1, 1]} : vector<8x128xf32> to vector<8x32xf32>
    %cst_5 = arith.constant 2.000000e+00 : f32
    %14 = vector.broadcast %cst_5 : f32 to vector<8x32xf32>
    %15 = arith.mulf %14, %13 : vector<8x32xf32>
    %cst_6 = arith.constant 1.000000e+00 : f32
    %16 = vector.broadcast %cst_6 : f32 to vector<8x32xf32>
    %17 = arith.subf %15, %16 : vector<8x32xf32>
    %18 = vector.extract_strided_slice %12 {offsets = [0, 0], sizes = [8, 32], strides = [1, 1]} : vector<8x128xf32> to vector<8x32xf32>
    %19 = arith.mulf %18, %17 : vector<8x32xf32>
    %20 = vector.extract_strided_slice %12 {offsets = [0, 96], sizes = [8, 32], strides = [1, 1]} : vector<8x128xf32> to vector<8x32xf32>
    %21 = math.tanh %19 : vector<8x32xf32>
    %22 = arith.mulf %20, %21 : vector<8x32xf32>
    %c24 = arith.constant 24 : index
    %c0_7 = arith.constant 0 : index
    %23 = vector.load %arg2[%c24, %c0_7] : memref<104x128xbf16, #tpu.memory_space<vmem>>, vector<32x128xbf16>
    %c56 = arith.constant 56 : index
    %c0_8 = arith.constant 0 : index
    %24 = vector.load %arg2[%c56, %c0_8] : memref<104x128xbf16, #tpu.memory_space<vmem>>, vector<1x128xbf16>
    %25 = arith.extf %24 : vector<1x128xbf16> to vector<1x128xf32>
    %26 = arith.truncf %22 : vector<8x32xf32> to vector<8x32xbf16>
    %cst_9 = arith.constant dense<0.000000e+00> : vector<8x128xf32>
    %27 = tpu.matmul %26, %23, %cst_9 {dimension_numbers = #tpu.dot_dimension_numbers<[1], [0], [0], [1], [0, 0, 1, 1], [], []>} : vector<8x32xbf16>, vector<32x128xbf16>, vector<8x128xf32> -> vector<8x128xf32>
    %28 = vector.broadcast %25 : vector<1x128xf32> to vector<8x128xf32>
    %29 = arith.addf %27, %28 : vector<8x128xf32>
    %30 = arith.negf %29 : vector<8x128xf32>
    %31 = math.exp %30 : vector<8x128xf32>
    %cst_10 = arith.constant 1.000000e+00 : f32
    %32 = vector.broadcast %cst_10 : f32 to vector<8x128xf32>
    %33 = arith.addf %32, %31 : vector<8x128xf32>
    %34 = arith.divf %32, %33 : vector<8x128xf32>
    %35 = vector.extract_strided_slice %34 {offsets = [0, 64], sizes = [8, 32], strides = [1, 1]} : vector<8x128xf32> to vector<8x32xf32>
    %cst_11 = arith.constant 2.000000e+00 : f32
    %36 = vector.broadcast %cst_11 : f32 to vector<8x32xf32>
    %37 = arith.mulf %36, %35 : vector<8x32xf32>
    %cst_12 = arith.constant 1.000000e+00 : f32
    %38 = vector.broadcast %cst_12 : f32 to vector<8x32xf32>
    %39 = arith.subf %37, %38 : vector<8x32xf32>
    %40 = vector.extract_strided_slice %34 {offsets = [0, 0], sizes = [8, 32], strides = [1, 1]} : vector<8x128xf32> to vector<8x32xf32>
    %41 = arith.mulf %40, %39 : vector<8x32xf32>
    %42 = vector.extract_strided_slice %34 {offsets = [0, 96], sizes = [8, 32], strides = [1, 1]} : vector<8x128xf32> to vector<8x32xf32>
    %43 = math.tanh %41 : vector<8x32xf32>
    %44 = arith.mulf %42, %43 : vector<8x32xf32>
    %c64 = arith.constant 64 : index
    %c0_13 = arith.constant 0 : index
    %45 = vector.load %arg2[%c64, %c0_13] : memref<104x128xbf16, #tpu.memory_space<vmem>>, vector<32x128xbf16>
    %c96 = arith.constant 96 : index
    %c0_14 = arith.constant 0 : index
    %46 = vector.load %arg2[%c96, %c0_14] : memref<104x128xbf16, #tpu.memory_space<vmem>>, vector<1x128xbf16>
    %47 = arith.extf %46 : vector<1x128xbf16> to vector<1x128xf32>
    %48 = arith.truncf %44 : vector<8x32xf32> to vector<8x32xbf16>
    %cst_15 = arith.constant dense<0.000000e+00> : vector<8x128xf32>
    %49 = tpu.matmul %48, %45, %cst_15 {dimension_numbers = #tpu.dot_dimension_numbers<[1], [0], [0], [1], [0, 0, 1, 1], [], []>} : vector<8x32xbf16>, vector<32x128xbf16>, vector<8x128xf32> -> vector<8x128xf32>
    %50 = vector.broadcast %47 : vector<1x128xf32> to vector<8x128xf32>
    %51 = arith.addf %49, %50 : vector<8x128xf32>
    %52 = arith.negf %51 : vector<8x128xf32>
    %53 = math.exp %52 : vector<8x128xf32>
    %cst_16 = arith.constant 1.000000e+00 : f32
    %54 = vector.broadcast %cst_16 : f32 to vector<8x128xf32>
    %55 = arith.addf %54, %53 : vector<8x128xf32>
    %56 = arith.divf %54, %55 : vector<8x128xf32>
    %57 = vector.extract_strided_slice %56 {offsets = [0, 0], sizes = [8, 4], strides = [1, 1]} : vector<8x128xf32> to vector<8x4xf32>
    %c0_17 = arith.constant 0 : index
    %c0_18 = arith.constant 0 : index
    %58 = vector.load %arg3[%c0_17, %c0_18] : memref<8x4xf32, #tpu.memory_space<vmem>>, vector<8x4xf32>
    tpu.vector_store %arg3[%c0_17, %c0_18], %57 {strides = array<i32>} : memref<8x4xf32, #tpu.memory_space<vmem>>, vector<8x4xf32>,
    return
  }
  func.func @transform_0(%arg0: i32) -> (i32, i32) {
    %c0_i32 = arith.constant 0 : i32
    %c0_i32_0 = arith.constant 0 : i32
    return %arg0, %c0_i32 : i32, i32
  }
  func.func @transform_1(%arg0: i32) -> (i32, i32) {
    %c0_i32 = arith.constant 0 : i32
    %c0_i32_0 = arith.constant 0 : i32
    %c0_i32_1 = arith.constant 0 : i32
    return %c0_i32, %c0_i32_0 : i32, i32
  }
  func.func @transform_2(%arg0: i32) -> (i32, i32) {
    %c0_i32 = arith.constant 0 : i32
    %c0_i32_0 = arith.constant 0 : i32
    return %arg0, %c0_i32 : i32, i32
  }
}

</mosaic_0001>

<bundles_post_ra>
// kernel: forward.1
= control target key start
LH: loop header
LB: loop body
LE: loop exit
PB: predicated region body
PF: predicated region fallthrough
CT: control target
= control target key end

     0   :  { %7 = vsyncpa [#allocation3], 0  ;;  %s489_s0 = inlined_call_operand.hbm [shape: f32[8,16], index: 0, kind: input, shape index: {}]   ;;  %s490_s1 = inlined_call_operand.hbm [shape: bf16[104,128], index: 1, kind: input, shape index: {}]   ;;  %s491_s2 = inlined_call_operand.vmem [shape: f32[8,4], index: 2, kind: output, shape index: {}]  }
   0x1   :  { %8 = vsyncpa [#allocation5], 0  ;;  %s409_s9 = smov [#allocation2]   ;;  %s410_s11 = smov [#allocation4]  }
   0x2   :  { %s15_s10 = sshll.u32 %s409_s9, 4  ;;  %s24_s12 = sshll.u32 %s410_s11, 4  ;;  %s16_s10 = int_to_ptr.vmem [resolvable:$true] %s15_s10  ;;  %s432_s12 = int_to_ptr.vmem [resolvable:$true] %s24_s12 }
   0x3   :  { %s361_s15 = scalar_lea.hbm %s489_s0, 128 }
   0x4   :  { %p362_p0 = scmp.ne.s32.totalorder %s489_s0, %s361_s15  ;;  %p365_p1 = scmp.lt.u32.totalorder %s361_s15, %s489_s0 }
   0x6   :  { %p367_p2 = pnand %p365_p1, %p362_p0 }
   0x8   :  { %370 = shalt.err (!%p367_p2)
}
   0x9   :  { %s371_s20 = scalar_lea.vmem %s16_s10, 128  ;;  %p376_p4 = scmp.lt.s32.totalorder %s16_s10, %s16_s10 }
   0xa   :  { %p372_p3 = scmp.ne.s32.totalorder %s16_s10, %s371_s20  ;;  %p377_p5 = scmp.lt.s32.totalorder %s371_s20, %s371_s20 }
   0xc   :  { %p378_p6 = por %p377_p5, %p376_p4 }
   0xe   :  { %p379_p7 = pnand %p378_p6, %p372_p3 }
  0x10   :  { %382 = shalt.err (!%p379_p7)
}
  0x11   :  { %18 = dma.hbm_to_vmem [thread:$0]  %s489_s0, 128, %s16_s10, [#allocation3]  }
  0x12   :  { %s383_s25 = scalar_lea.hbm %s490_s1, 832 }
  0x13   :  { %p384_p8 = scmp.ne.s32.totalorder %s490_s1, %s383_s25  ;;  %p387_p9 = scmp.lt.u32.totalorder %s383_s25, %s490_s1 }
  0x15   :  { %p389_p10 = pnand %p387_p9, %p384_p8 }
  0x17   :  { %392 = shalt.err (!%p389_p10)
}
  0x18   :  { %s393_s30 = scalar_lea.vmem %s432_s12, 832  ;;  %p398_p12 = scmp.lt.s32.totalorder %s432_s12, %s432_s12 }
  0x19   :  { %p394_p11 = scmp.ne.s32.totalorder %s432_s12, %s393_s30  ;;  %p399_p13 = scmp.lt.s32.totalorder %s393_s30, %s393_s30 }
  0x1b   :  { %p400_p0 = por %p399_p13, %p398_p12 }
  0x1d   :  { %p401_p1 = pnand %p400_p0, %p394_p11 }
  0x1f   :  { %404 = shalt.err (!%p401_p1)
}
  0x20   :  { %s411_s0 = smov 64   ;;  %s412_s3 = smov 4  }
  0x21   :  { %30 = dma.hbm_to_vmem [thread:$0]  %s490_s1, 832, %s432_s12, [#allocation5], %s411_s0, %s411_s0, %s412_s3  }
  0x22   :  { %405 = dma.done.wait [#allocation3], 128  }
  0x23   :  { %406 = vsyncadd [#allocation3], 4294967168 }
  0x24   :  { %407 = dma.done.wait [#allocation5], 832  }
  0x25   :  { %408 = vsyncadd [#allocation5], 4294966464  ;;  %v413_v0 = vmov 0.0   ;;  %vm414_vm0 = vmmov 0   ;;  %v340_v1 = vld [vmem:[#allocation4] sm:$0xff]   ;;  %v38_v2 = vld [vmem:[#allocation2] sm:$0xff]  ;;  %v44_v4 = vlaneseq }
  0x26   :  { %310 = vmatprep.subr.bf16.mxu0 %v413_v0  ;;  %312 = vmatprep.mubr.msk.bf16.mxu0 %vm414_vm0, %v413_v0  ;;  %vm54_vm1 = vcmask 130048   ;;  %v43_v3 = vpack.c.bf16 %v38_v2, %v38_v2  ;;  %v41_v6 = vld [vmem:[#allocation4 + $0x8] sm:$0x1]  ;;  %v341_v23 = vld [vmem:[#allocation4 + $0xc] sm:$0xff]   ;;  %v342_v24 = vld [vmem:[#allocation4 + $0x14] sm:$0xff]   ;;  %s415_s1 = smov 96  }
  0x27   :  { %316 = vmatprep.subr.bf16.mxu1 %v413_v0  ;;  %320 = vmatprep.mubr.msk.bf16.mxu1 %vm414_vm0, %v413_v0  ;;  %v45_v5 = vshrl.u32 %v44_v4, 7  ;;  %v42_v7 = vunpack.c.l.bf16 %v41_v6  ;;  %s416_s6 = smov 32   ;;  %vm143_vm2 = vcmask 261120   ;;  %v121_v30 = vld [vmem:[#allocation4 + $0x1c] sm:$0x1]  ;;  %v343_v46 = vld [vmem:[#allocation4 + $0x20] sm:$0xff]  }
  0x28   :  { %311 = vmatpush3.bf16.msra.mxu0 %v340_v1  ;;  %317 = vmatpush3.bf16.msra.mxu1 %v341_v23  ;;  %v122_v31 = vunpack.c.l.bf16 %v121_v30  ;;  %v344_v47 = vld [vmem:[#allocation4 + $0x28] sm:$0xff]   ;;  %v210_v53 = vld [vmem:[#allocation4 + $0x30] sm:$0x1]  ;;  %vm281_vm3 = vcmask 31744  }
  0x29   :  { %324 = vmatprep.subr.bf16.mxu0 %v413_v0  ;;  %v471_v8 = vsub.s32 0, %v45_v5  ;;  %318 = vmatprep.subr.bf16.mxu1 %v413_v0  ;;  %v211_v54 = vunpack.c.l.bf16 %v210_v53 }
  0x2b   :  { %313 = vmatmul.mubr.msk.bf16.vlgmr.msra.gmra.mrb[0].mxu0 %vm54_vm1, %v43_v3  ;;  %v47_v9 = vrot.slane %v42_v7, %v471_v8  ;;  %v127_v32 = vrot.slane %v122_v31, %v471_v8  ;;  %v216_v55 = vrot.slane %v211_v54, %v471_v8 }
  0x2c   :  { %328 = vmatprep.mubr.msk.bf16.mxu0 %vm414_vm0, %v413_v0  ;;  %319 = vmatpush3.bf16.msra.mxu1 %v342_v24 }
  0x2d   :  { %325 = vmatpush3.bf16.msra.mxu0 %v343_v46 }
  0x2e   :  { %326 = vmatprep.subr.bf16.mxu0 %v413_v0 }
  0x31   :  { %327 = vmatpush3.bf16.msra.mxu0 %v344_v47 }
  0xfe   :  { %v92_v10 = vpop.f32.mrb[0].mxu0 }
  0xff   :  { %v93_v11 = vadd.f32 %v92_v10, %v47_v9  ;;  %v314_v12 = vpop.f32.mrb[1].mxu0 }
 0x100   :  { %v95_v13 = vpop.f32.mrb[2].mxu0 }
 0x101   :  { %v291_v14 = vmul.f32 -1.442695, %v93_v11  ;;  %v315_v15 = vpop.f32.mrb[3].mxu0 }
 0x103   :  { %345 = vpow2.f32 %v291_v14 }
 0x10d   :  { %v346_v16 = vpop.eup %345 }
 0x10e   :  { %v101_v17 = vadd.f32 1.0, %v346_v16 }
 0x110   :  { %347 = vrcp.f32 %v101_v17 }
 0x11a   :  { %v348_v18 = vpop.eup %347 }
 0x11b   :  { %v104_v19 = vmul.f32 2.0, %v348_v18 }
 0x11d   :  { %v292_v20 = vadd.f32 -1.0, %v104_v19 }
 0x11f   :  { %107 = vrot.lane.b32.xlu0 %v292_v20, %s411_s0 }
 0x191   :  { %v108_v21 = vpop.permute.xlu0 %107 }
 0x192   :  { %v110_v22 = vmul.f32 %v348_v18, %v108_v21 }
 0x194   :  { %349 = vtanh.f32 %v110_v22 }
 0x19e   :  { %v350_v25 = vpop.eup %349 }
 0x19f   :  { %113 = vrot.lane.b32.xlu0 %v350_v25, %s415_s1 }
 0x211   :  { %v114_v26 = vpop.permute.xlu0 %113 }
 0x212   :  { %v116_v27 = vmul.f32 %v348_v18, %v114_v26 }
 0x214   :  { %v123_v28 = vpack.c.bf16 %v116_v27, %v116_v27 }
 0x216   :  { %129 = vrot.lane.b32.xlu1 %v123_v28, %s416_s6 }
 0x288   :  { %v130_v29 = vpop.permute.xlu1 %129 }
 0x289   :  { %321 = vmatmul.mubr.msk.bf16.vlgmr.msra.gmra.mrb[0].mxu1 %vm143_vm2, %v130_v29 }
 0x35c   :  { %v181_v33 = vpop.f32.mrb[0].mxu1 }
 0x35d   :  { %v182_v34 = vadd.f32 %v181_v33, %v127_v32  ;;  %v322_v35 = vpop.f32.mrb[1].mxu1 }
 0x35e   :  { %v184_v36 = vpop.f32.mrb[2].mxu1 }
 0x35f   :  { %v296_v37 = vmul.f32 -1.442695, %v182_v34  ;;  %v323_v38 = vpop.f32.mrb[3].mxu1 }
 0x361   :  { %351 = vpow2.f32 %v296_v37 }
 0x36b   :  { %v352_v39 = vpop.eup %351 }
 0x36c   :  { %v190_v40 = vadd.f32 1.0, %v352_v39 }
 0x36e   :  { %353 = vrcp.f32 %v190_v40 }
 0x378   :  { %v354_v41 = vpop.eup %353 }
 0x379   :  { %v193_v42 = vmul.f32 2.0, %v354_v41 }
 0x37b   :  { %v297_v43 = vadd.f32 -1.0, %v193_v42 }
 0x37d   :  { %196 = vrot.lane.b32.xlu1 %v297_v43, %s411_s0 }
 0x3ef   :  { %v197_v44 = vpop.permute.xlu1 %196 }
 0x3f0   :  { %v199_v45 = vmul.f32 %v354_v41, %v197_v44 }
 0x3f2   :  { %355 = vtanh.f32 %v199_v45 }
 0x3fc   :  { %v356_v48 = vpop.eup %355 }
 0x3fd   :  { %202 = vrot.lane.b32.xlu0 %v356_v48, %s415_s1 }
 0x46f   :  { %v203_v49 = vpop.permute.xlu0 %202 }
 0x470   :  { %v205_v50 = vmul.f32 %v354_v41, %v203_v49 }
 0x472   :  { %v212_v51 = vpack.c.bf16 %v205_v50, %v205_v50 }
 0x474   :  { %218 = vrot.lane.b32.xlu1 %v212_v51, %s416_s6 }
 0x4e6   :  { %v219_v52 = vpop.permute.xlu1 %218 }
 0x4e7   :  { %329 = vmatmul.mubr.msk.bf16.vlgmr.msra.gmra.mrb[4].mxu0 %vm143_vm2, %v219_v52 }
 0x5ba   :  { %v269_v56 = vpop.f32.mrb[4].mxu0 }
 0x5bb   :  { %v270_v57 = vadd.f32 %v269_v56, %v216_v55  ;;  %v330_v58 = vpop.f32.mrb[5].mxu0 }
 0x5bc   :  { %v272_v59 = vpop.f32.mrb[6].mxu0 }
 0x5bd   :  { %v301_v60 = vmul.f32 -1.442695, %v270_v57  ;;  %v331_v61 = vpop.f32.mrb[7].mxu0 }
 0x5bf   :  { %357 = vpow2.f32 %v301_v60 }
 0x5c9   :  { %v358_v62 = vpop.eup %357 }
 0x5ca   :  { %v278_v63 = vadd.f32 1.0, %v358_v62 }
 0x5cc   :  { %359 = vrcp.f32 %v278_v63 }
 0x5d6   :  { %v360_v0 = vpop.eup %359 }
 0x5d7   :  { %282 = vst.msk [vmem:[%s491_s2] sm:$0xff] %vm281_vm3, %v360_v0 }
 0x5d8   :  { %287 = vsyncpa [#allocation3], 1 }
 0x5d9   :  { %288 = vsyncpa [#allocation5], 1 }

</bundles_post_ra>
